<compile_context>
chip_gen: v6e
topology: v6e:2x2x1
jax: 0.10.0
libtpu: 0.0.40
codegen_flags: <defaults>
</compile_context>

<pallas_src>
import functools

import jax
import jax.numpy as jnp
from jax.experimental import pallas as pl
from jax.experimental.pallas import tpu as pltpu


def _round_up(x, m):
    return ((x + m - 1) // m) * m


# ----------------------------------------------------------------------------
# Fused IDEC forward kernel (one grid step = one batch tile of TM rows).
#
#   h      = relu(x @ W_enc1 + b_enc1)
#   z      = h @ W_enc2 + b_enc2
#   yc     = z @ [W_dec1 | W_glob | -2*mu^T] + [b_dec1 | b_glob | ||mu||^2]
#   hd     = relu(yc[:, :H1]);  x_glob = yc[:, H1:H1+G]
#   dist   = max(||z||^2 + yc[:, H1+G:], 0)
#   q      = normalize( (1 + dist/alpha)^(-(alpha+1)/2) )
#   x_bar  = hd @ W_dec2 + b_dec2
# ----------------------------------------------------------------------------
def _idec_fused_kernel(x_ref, w1_ref, b1_ref, w2_ref, b2_ref,
                       wz_ref, bz_ref, w3_ref, b3_ref,
                       xbar_ref, packed_ref, *,
                       h1, latent, d_glob, n_clusters, alpha, mm_dtype):
    # ----- encoder -----
    # In-kernel cast (no wrapper-side HBM round trip); no-op when mm_dtype is f32.
    x = x_ref[...].astype(mm_dtype)
    h = jnp.dot(x, w1_ref[...], preferred_element_type=jnp.float32) + b1_ref[...]
    h = jnp.maximum(h, 0.0)
    z = jnp.dot(h.astype(mm_dtype), w2_ref[...],
                preferred_element_type=jnp.float32) + b2_ref[...]

    # ----- one lane-dense MXU pass for all three z-consumers -----
    yc = jnp.dot(z.astype(mm_dtype), wz_ref[...],
                 preferred_element_type=jnp.float32) + bz_ref[...]
    hd = jnp.maximum(yc[:, :h1], 0.0)
    x_glob = yc[:, h1:h1 + d_glob]
    cross = yc[:, h1 + d_glob:h1 + d_glob + n_clusters]     # -2 z.mu^T + ||mu||^2

    # ----- soft assignment q -----
    z_sq = jnp.sum(z * z, axis=1, keepdims=True)
    dist = jnp.maximum(z_sq + cross, 0.0)                   # clamp cancellation negatives
    q = pl.reciprocal(1.0 + dist * (1.0 / alpha), approx=True)   # EUP slot, co-issues
    exponent = (alpha + 1.0) / 2.0
    if exponent != 1.0:                                     # static skip for alpha == 1
        q = q ** exponent
    q = q / jnp.sum(q, axis=1, keepdims=True)               # exact row-normalization

    # ----- decoder output -----
    xbar = jnp.dot(hd.astype(mm_dtype), w3_ref[...],
                   preferred_element_type=jnp.float32) + b3_ref[...]
    xbar_ref[...] = xbar.astype(xbar_ref.dtype)

    # ----- packed small outputs: direct sub-slice stores (no concat, no zeros slab).
    # Lanes >= latent+d_glob+n_clusters are never written: don't-care bytes that go to
    # HBM but are never read back by the wrapper.
    packed_ref[:, :latent] = z.astype(packed_ref.dtype)
    packed_ref[:, latent:latent + d_glob] = x_glob.astype(packed_ref.dtype)
    packed_ref[:, latent + d_glob:latent + d_glob + n_clusters] = q.astype(packed_ref.dtype)


def _choose_batch_tile(batch, tm_request):
    """Pick an 8-aligned batch tile; guarantee >= 4 grid steps when the batch allows."""
    padded_b8 = _round_up(batch, 8)
    if padded_b8 >= 32:
        # Cap so grid length >= 4 (keeps both v7x TensorCores busy + pipeline full).
        tm_cap = max(8, (padded_b8 // 4) // 8 * 8)
    else:
        tm_cap = padded_b8
    tm = min(max(tm_request, 8), tm_cap, padded_b8)
    return _round_up(tm, 8)


# ----------------------------------------------------------------------------
# Wrapper: NCHW -> flat, pad batch, one fused pallas_call, split outputs.
# ----------------------------------------------------------------------------
def idec_forward(params, x_nchw, alpha=1.0, tm=1024, use_bf16_matmul=False,
                 xbar_dtype=jnp.float32):
    B, C, H, W = x_nchw.shape
    d_in = C * H * W
    x = x_nchw.reshape(B, d_in).astype(jnp.float32)     # matches torch .view(B, -1)

    w1, b1 = params["enc1"]
    w2, b2 = params["enc2"]
    wd1, bd1 = params["dec1"]
    wd2, bd2 = params["dec2"]
    wg, bg = params["glob"]
    mu = params["cluster_layer"]

    h1 = w1.shape[1]
    latent = w2.shape[1]
    d_glob = wg.shape[1]
    n_clusters = mu.shape[0]

    # Concatenated z-consuming weights; ||mu||^2 folded into the bias row (computed once
    # here, not per grid step), so the cluster cross-term shares the dec1/glob MXU pass.
    wz = jnp.concatenate([wd1, wg, -2.0 * mu.T], axis=1)
    bz = jnp.concatenate([bd1, bg, jnp.sum(mu * mu, axis=1)], axis=0)
    wn = wz.shape[1]

    # Batch tiling.
    tm = _choose_batch_tile(B, tm)
    grid_len = -(-_round_up(B, 8) // tm)
    padded_b = grid_len * tm
    if padded_b != B:
        x = jnp.pad(x, ((0, padded_b - B), (0, 0)))

    pack_width = 128
    assert latent + d_glob + n_clusters <= pack_width

    mm_dtype = jnp.bfloat16 if use_bf16_matmul else jnp.float32
    # Weights cast once in the wrapper (DMA'd once, VMEM-resident across the grid).
    w1_in = w1.astype(mm_dtype)
    w2_in = w2.astype(mm_dtype)
    wz_in = wz.astype(mm_dtype)
    wd2_in = wd2.astype(mm_dtype)
    # Biases stay f32 (added to the f32 accumulator).
    b1r, b2r = b1.reshape(1, -1), b2.reshape(1, -1)
    bzr, bd2r = bz.reshape(1, -1), bd2.reshape(1, -1)

    # VMEM budget: 2x only the streamed activation tiles (double-buffered) + 1x the
    # constant-index weights/biases (fetched once) + ~30% headroom. Capped at 48 MiB so
    # the same limit is safe on v7x's 64 MiB/TC as well as v5e/v6e's 128 MiB.
    in_itemsize = 4                                        # x streams in as f32
    out_itemsize = jnp.dtype(xbar_dtype).itemsize
    w_itemsize = jnp.dtype(mm_dtype).itemsize
    act_bytes = tm * d_in * (in_itemsize + out_itemsize) + tm * pack_width * 4
    weight_bytes = ((d_in * h1 + h1 * latent + latent * wn + h1 * d_in) * w_itemsize
                    + (h1 + latent + wn + d_in) * 4)
    est = 2 * act_bytes + weight_bytes
    vmem_limit = int(min(48 << 20, max(16 << 20, int(1.3 * est))))

    # Advisory cost hint for XLA's scheduler around the custom call.
    flops = 2 * padded_b * (d_in * h1 + h1 * latent + latent * wn + h1 * d_in)
    cost = pl.CostEstimate(
        flops=int(flops),
        transcendentals=int(padded_b * n_clusters),
        bytes_accessed=int(padded_b * d_in * (in_itemsize + out_itemsize)
                           + padded_b * pack_width * 4 + weight_bytes))

    kernel = functools.partial(
        _idec_fused_kernel, h1=h1, latent=latent, d_glob=d_glob,
        n_clusters=n_clusters, alpha=float(alpha), mm_dtype=mm_dtype)

    # NOTE: if d_in / h1 grow to multi-K sizes, add a K-reduction grid axis (last,
    # "arbitrary") with a VMEM f32 accumulator for the enc1/dec2 matmuls before growing
    # tiles further (re-derive the cap against v7x's 64 MiB/TC).
    xbar_flat, packed = pl.pallas_call(
        kernel,
        out_shape=(jax.ShapeDtypeStruct((padded_b, d_in), xbar_dtype),
                   jax.ShapeDtypeStruct((padded_b, pack_width), jnp.float32)),
        grid=(grid_len,),
        in_specs=[
            pl.BlockSpec((tm, d_in), lambda i: (i, 0)),       # x tile (streamed)
            pl.BlockSpec((d_in, h1), lambda i: (0, 0)),       # weights: VMEM-resident
            pl.BlockSpec((1, h1), lambda i: (0, 0)),
            pl.BlockSpec((h1, latent), lambda i: (0, 0)),
            pl.BlockSpec((1, latent), lambda i: (0, 0)),
            pl.BlockSpec((latent, wn), lambda i: (0, 0)),
            pl.BlockSpec((1, wn), lambda i: (0, 0)),
            pl.BlockSpec((h1, d_in), lambda i: (0, 0)),
            pl.BlockSpec((1, d_in), lambda i: (0, 0)),
        ],
        out_specs=(pl.BlockSpec((tm, d_in), lambda i: (i, 0)),
                   pl.BlockSpec((tm, pack_width), lambda i: (i, 0))),
        compiler_params=pltpu.CompilerParams(
            dimension_semantics=("parallel",),   # v7x: both TensorCores split the batch
            vmem_limit_bytes=vmem_limit,
        ),
        cost_estimate=cost,
    )(x, w1_in, b1r, w2_in, b2r, wz_in, bzr, wd2_in, bd2r)

    x_bar = xbar_flat[:B].reshape(B, C, H, W)
    z = packed[:B, :latent]
    x_global_bar = packed[:B, latent:latent + d_glob]
    q = packed[:B, latent + d_glob:latent + d_glob + n_clusters]
    return x_bar, x_global_bar, q, z


# ----------------------------------------------------------------------------
# Deterministic parameter initialization + pure-JAX reference
# ----------------------------------------------------------------------------
def init_params(key, d_in, hidden, latent, d_global, n_clusters):
    ks = jax.random.split(key, 11)

    def dense(kw, kb, fan_in, fan_out):
        scale = (2.0 / (fan_in + fan_out)) ** 0.5
        w = scale * jax.random.normal(kw, (fan_in, fan_out), dtype=jnp.float32)
        b = jnp.zeros((fan_out,), dtype=jnp.float32)
        return w, b

    params = {}
    params["enc1"] = dense(ks[0], ks[1], d_in, hidden)
    params["enc2"] = dense(ks[2], ks[3], hidden, latent)
    params["dec1"] = dense(ks[4], ks[5], latent, hidden)
    params["dec2"] = dense(ks[6], ks[7], hidden, d_in)
    params["glob"] = dense(ks[8], ks[9], latent, d_global)
    # cluster_layer: xavier_normal_ on (n_clusters, latent)
    xav = (2.0 / (n_clusters + latent)) ** 0.5
    params["cluster_layer"] = xav * jax.random.normal(
        ks[10], (n_clusters, latent), dtype=jnp.float32)
    return params


def idec_reference(params, x_nchw, alpha=1.0):
    B, C, H, W = x_nchw.shape
    x = x_nchw.reshape(B, -1).astype(jnp.float32)
    w1, b1 = params["enc1"]
    w2, b2 = params["enc2"]
    wd1, bd1 = params["dec1"]
    wd2, bd2 = params["dec2"]
    wg, bg = params["glob"]
    mu = params["cluster_layer"]
    h = jnp.maximum(x @ w1 + b1, 0.0)
    z = h @ w2 + b2
    hd = jnp.maximum(z @ wd1 + bd1, 0.0)
    x_bar = (hd @ wd2 + bd2).reshape(B, C, H, W)
    x_glob = z @ wg + bg
    dist = jnp.sum((z[:, None, :] - mu[None, :, :]) ** 2, axis=2)
    q = 1.0 / (1.0 + dist / alpha)
    q = q ** ((alpha + 1.0) / 2.0)
    q = q / jnp.sum(q, axis=1, keepdims=True)
    return x_bar, x_glob, q, z


if __name__ == "__main__":
    # Small deterministic example consistent with an NCHW input + dense AE.
    B, C, H, W = 2, 4, 16, 16
    hidden, latent, d_global, n_clusters = 32, 16, 8, 8
    d_in = C * H * W

    key = jax.random.PRNGKey(0)
    k_x, k_p = jax.random.split(key)
    x = jax.random.normal(k_x, (B, C, H, W), dtype=jnp.float32)
    params = init_params(k_p, d_in, hidden, latent, d_global, n_clusters)

    x_bar, x_global_bar, q, z = idec_forward(params, x, alpha=1.0)
    jax.block_until_ready((x_bar, x_global_bar, q, z))

    # Shape / semantics sanity vs. the PyTorch forward.
    assert x_bar.shape == (B, C, H, W)
    assert x_global_bar.shape == (B, d_global)
    assert q.shape == (B, n_clusters)
    assert z.shape == (B, latent)
    assert bool(jnp.allclose(jnp.sum(q, axis=1), 1.0, atol=1e-5))

    # Loose numeric check against pure-JAX reference (MXU f32 passes + approx reciprocal).
    rx, rg, rq, rz = idec_reference(params, x, alpha=1.0)
    assert bool(jnp.allclose(x_bar, rx, rtol=5e-2, atol=5e-2))
    assert bool(jnp.allclose(x_global_bar, rg, rtol=5e-2, atol=5e-2))
    assert bool(jnp.allclose(q, rq, rtol=5e-2, atol=5e-2))
    assert bool(jnp.allclose(z, rz, rtol=5e-2, atol=5e-2))

    print("KERNEL_OK")
</pallas_src>

<mosaic_0001>
module attributes {stable_mosaic.version = 11 : i64} {
  func.func @_idec_fused_kernel(%arg0: i32, %arg1: memref<8x1024xf32, #tpu.memory_space<vmem>>, %arg2: memref<1024x32xf32, #tpu.memory_space<vmem>>, %arg3: memref<1x32xf32, #tpu.memory_space<vmem>>, %arg4: memref<32x16xf32, #tpu.memory_space<vmem>>, %arg5: memref<1x16xf32, #tpu.memory_space<vmem>>, %arg6: memref<16x48xf32, #tpu.memory_space<vmem>>, %arg7: memref<1x48xf32, #tpu.memory_space<vmem>>, %arg8: memref<32x1024xf32, #tpu.memory_space<vmem>>, %arg9: memref<1x1024xf32, #tpu.memory_space<vmem>>, %arg10: memref<8x1024xf32, #tpu.memory_space<vmem>>, %arg11: memref<8x128xf32, #tpu.memory_space<vmem>>) attributes {dimension_semantics = [#tpu.dimension_semantics<parallel>], iteration_bounds = array<i64: 1>, scalar_prefetch = 0 : i64, scratch_operands = 0 : i64, tpu.core_type = #tpu.core_type<tc>, window_params = [{transform_indices = @transform_0, window_bounds = array<i64: 8, 1024>}, {pipeline_mode = #tpu.pipeline_mode<synchronous>, transform_indices = @transform_1, window_bounds = array<i64: 1024, 32>}, {pipeline_mode = #tpu.pipeline_mode<synchronous>, transform_indices = @transform_2, window_bounds = array<i64: 1, 32>}, {pipeline_mode = #tpu.pipeline_mode<synchronous>, transform_indices = @transform_3, window_bounds = array<i64: 32, 16>}, {pipeline_mode = #tpu.pipeline_mode<synchronous>, transform_indices = @transform_4, window_bounds = array<i64: 1, 16>}, {pipeline_mode = #tpu.pipeline_mode<synchronous>, transform_indices = @transform_5, window_bounds = array<i64: 16, 48>}, {pipeline_mode = #tpu.pipeline_mode<synchronous>, transform_indices = @transform_6, window_bounds = array<i64: 1, 48>}, {pipeline_mode = #tpu.pipeline_mode<synchronous>, transform_indices = @transform_7, window_bounds = array<i64: 32, 1024>}, {pipeline_mode = #tpu.pipeline_mode<synchronous>, transform_indices = @transform_8, window_bounds = array<i64: 1, 1024>}, {transform_indices = @transform_9, window_bounds = array<i64: 8, 1024>}, {transform_indices = @transform_10, window_bounds = array<i64: 8, 128>}]} {
    %c0 = arith.constant 0 : index
    %c0_0 = arith.constant 0 : index
    %0 = vector.load %arg1[%c0, %c0_0] : memref<8x1024xf32, #tpu.memory_space<vmem>>, vector<8x1024xf32>
    %c0_1 = arith.constant 0 : index
    %c0_2 = arith.constant 0 : index
    %1 = vector.load %arg2[%c0_1, %c0_2] : memref<1024x32xf32, #tpu.memory_space<vmem>>, vector<1024x32xf32>
    %cst = arith.constant dense<0.000000e+00> : vector<8x32xf32>
    %2 = tpu.matmul %0, %1, %cst {dimension_numbers = #tpu.dot_dimension_numbers<[1], [0], [0], [1], [0, 0, 1, 1], [], []>} : vector<8x1024xf32>, vector<1024x32xf32>, vector<8x32xf32> -> vector<8x32xf32>
    %c0_3 = arith.constant 0 : index
    %c0_4 = arith.constant 0 : index
    %3 = vector.load %arg3[%c0_3, %c0_4] : memref<1x32xf32, #tpu.memory_space<vmem>>, vector<1x32xf32>
    %4 = vector.broadcast %3 : vector<1x32xf32> to vector<8x32xf32>
    %5 = arith.addf %2, %4 : vector<8x32xf32>
    %cst_5 = arith.constant 0.000000e+00 : f32
    %6 = vector.broadcast %cst_5 : f32 to vector<8x32xf32>
    %7 = arith.maximumf %5, %6 : vector<8x32xf32>
    %c0_6 = arith.constant 0 : index
    %c0_7 = arith.constant 0 : index
    %8 = vector.load %arg4[%c0_6, %c0_7] : memref<32x16xf32, #tpu.memory_space<vmem>>, vector<32x16xf32>
    %cst_8 = arith.constant dense<0.000000e+00> : vector<8x16xf32>
    %9 = tpu.matmul %7, %8, %cst_8 {dimension_numbers = #tpu.dot_dimension_numbers<[1], [0], [0], [1], [0, 0, 1, 1], [], []>} : vector<8x32xf32>, vector<32x16xf32>, vector<8x16xf32> -> vector<8x16xf32>
    %c0_9 = arith.constant 0 : index
    %c0_10 = arith.constant 0 : index
    %10 = vector.load %arg5[%c0_9, %c0_10] : memref<1x16xf32, #tpu.memory_space<vmem>>, vector<1x16xf32>
    %11 = vector.broadcast %10 : vector<1x16xf32> to vector<8x16xf32>
    %12 = arith.addf %9, %11 : vector<8x16xf32>
    %c0_11 = arith.constant 0 : index
    %c0_12 = arith.constant 0 : index
    %13 = vector.load %arg6[%c0_11, %c0_12] : memref<16x48xf32, #tpu.memory_space<vmem>>, vector<16x48xf32>
    %cst_13 = arith.constant dense<0.000000e+00> : vector<8x48xf32>
    %14 = tpu.matmul %12, %13, %cst_13 {dimension_numbers = #tpu.dot_dimension_numbers<[1], [0], [0], [1], [0, 0, 1, 1], [], []>} : vector<8x16xf32>, vector<16x48xf32>, vector<8x48xf32> -> vector<8x48xf32>
    %c0_14 = arith.constant 0 : index
    %c0_15 = arith.constant 0 : index
    %15 = vector.load %arg7[%c0_14, %c0_15] : memref<1x48xf32, #tpu.memory_space<vmem>>, vector<1x48xf32>
    %16 = vector.broadcast %15 : vector<1x48xf32> to vector<8x48xf32>
    %17 = arith.addf %14, %16 : vector<8x48xf32>
    %18 = vector.extract_strided_slice %17 {offsets = [0, 0], sizes = [8, 32], strides = [1, 1]} : vector<8x48xf32> to vector<8x32xf32>
    %cst_16 = arith.constant 0.000000e+00 : f32
    %19 = vector.broadcast %cst_16 : f32 to vector<8x32xf32>
    %20 = arith.maximumf %18, %19 : vector<8x32xf32>
    %21 = vector.extract_strided_slice %17 {offsets = [0, 32], sizes = [8, 8], strides = [1, 1]} : vector<8x48xf32> to vector<8x8xf32>
    %22 = vector.extract_strided_slice %17 {offsets = [0, 40], sizes = [8, 8], strides = [1, 1]} : vector<8x48xf32> to vector<8x8xf32>
    %23 = arith.mulf %12, %12 : vector<8x16xf32>
    %cst_17 = arith.constant dense<0.000000e+00> : vector<8xf32>
    %24 = vector.multi_reduction <add>, %23, %cst_17 [1] : vector<8x16xf32> to vector<8xf32>
    %25 = vector.shape_cast %24 : vector<8xf32> to vector<8x1xf32>
    %26 = vector.broadcast %25 : vector<8x1xf32> to vector<8x8xf32>
    %27 = arith.addf %26, %22 : vector<8x8xf32>
    %cst_18 = arith.constant 0.000000e+00 : f32
    %28 = vector.broadcast %cst_18 : f32 to vector<8x8xf32>
    %29 = arith.maximumf %27, %28 : vector<8x8xf32>
    %cst_19 = arith.constant 1.000000e+00 : f32
    %30 = vector.broadcast %cst_19 : f32 to vector<8x8xf32>
    %31 = arith.mulf %29, %30 : vector<8x8xf32>
    %cst_20 = arith.constant 1.000000e+00 : f32
    %32 = vector.broadcast %cst_20 : f32 to vector<8x8xf32>
    %33 = arith.addf %32, %31 : vector<8x8xf32>
    %34 = tpu.reciprocal %33 {approx = true} : vector<8x8xf32> -> vector<8x8xf32>
    %cst_21 = arith.constant dense<0.000000e+00> : vector<8xf32>
    %35 = vector.multi_reduction <add>, %34, %cst_21 [1] : vector<8x8xf32> to vector<8xf32>
    %36 = vector.shape_cast %35 : vector<8xf32> to vector<8x1xf32>
    %37 = vector.broadcast %36 : vector<8x1xf32> to vector<8x8xf32>
    %38 = arith.divf %34, %37 : vector<8x8xf32>
    %c0_22 = arith.constant 0 : index
    %c0_23 = arith.constant 0 : index
    %39 = vector.load %arg8[%c0_22, %c0_23] : memref<32x1024xf32, #tpu.memory_space<vmem>>, vector<32x1024xf32>
    %cst_24 = arith.constant dense<0.000000e+00> : vector<8x1024xf32>
    %40 = tpu.matmul %20, %39, %cst_24 {dimension_numbers = #tpu.dot_dimension_numbers<[1], [0], [0], [1], [0, 0, 1, 1], [], []>} : vector<8x32xf32>, vector<32x1024xf32>, vector<8x1024xf32> -> vector<8x1024xf32>
    %c0_25 = arith.constant 0 : index
    %c0_26 = arith.constant 0 : index
    %41 = vector.load %arg9[%c0_25, %c0_26] : memref<1x1024xf32, #tpu.memory_space<vmem>>, vector<1x1024xf32>
    %42 = vector.broadcast %41 : vector<1x1024xf32> to vector<8x1024xf32>
    %43 = arith.addf %40, %42 : vector<8x1024xf32>
    %c0_27 = arith.constant 0 : index
    %c0_28 = arith.constant 0 : index
    %44 = vector.load %arg10[%c0_27, %c0_28] : memref<8x1024xf32, #tpu.memory_space<vmem>>, vector<8x1024xf32>
    tpu.vector_store %arg10[%c0_27, %c0_28], %43 {strides = array<i32>} : memref<8x1024xf32, #tpu.memory_space<vmem>>, vector<8x1024xf32>,
    %c0_29 = arith.constant 0 : index
    %c0_30 = arith.constant 0 : index
    %45 = vector.load %arg11[%c0_29, %c0_30] : memref<8x128xf32, #tpu.memory_space<vmem>>, vector<8x16xf32>
    tpu.vector_store %arg11[%c0_29, %c0_30], %12 {strides = array<i32>} : memref<8x128xf32, #tpu.memory_space<vmem>>, vector<8x16xf32>,
    %c0_31 = arith.constant 0 : index
    %c16 = arith.constant 16 : index
    %46 = vector.load %arg11[%c0_31, %c16] : memref<8x128xf32, #tpu.memory_space<vmem>>, vector<8x8xf32>
    tpu.vector_store %arg11[%c0_31, %c16], %21 {strides = array<i32>} : memref<8x128xf32, #tpu.memory_space<vmem>>, vector<8x8xf32>,
    %c0_32 = arith.constant 0 : index
    %c24 = arith.constant 24 : index
    %47 = vector.load %arg11[%c0_32, %c24] : memref<8x128xf32, #tpu.memory_space<vmem>>, vector<8x8xf32>
    tpu.vector_store %arg11[%c0_32, %c24], %38 {strides = array<i32>} : memref<8x128xf32, #tpu.memory_space<vmem>>, vector<8x8xf32>,
    return
  }
  func.func @transform_0(%arg0: i32) -> (i32, i32) {
    %c0_i32 = arith.constant 0 : i32
    %c0_i32_0 = arith.constant 0 : i32
    return %arg0, %c0_i32 : i32, i32
  }
  func.func @transform_1(%arg0: i32) -> (i32, i32) {
    %c0_i32 = arith.constant 0 : i32
    %c0_i32_0 = arith.constant 0 : i32
    %c0_i32_1 = arith.constant 0 : i32
    return %c0_i32, %c0_i32_0 : i32, i32
  }
  func.func @transform_2(%arg0: i32) -> (i32, i32) {
    %c0_i32 = arith.constant 0 : i32
    %c0_i32_0 = arith.constant 0 : i32
    %c0_i32_1 = arith.constant 0 : i32
    return %c0_i32, %c0_i32_0 : i32, i32
  }
  func.func @transform_3(%arg0: i32) -> (i32, i32) {
    %c0_i32 = arith.constant 0 : i32
    %c0_i32_0 = arith.constant 0 : i32
    %c0_i32_1 = arith.constant 0 : i32
    return %c0_i32, %c0_i32_0 : i32, i32
  }
  func.func @transform_4(%arg0: i32) -> (i32, i32) {
    %c0_i32 = arith.constant 0 : i32
    %c0_i32_0 = arith.constant 0 : i32
    %c0_i32_1 = arith.constant 0 : i32
    return %c0_i32, %c0_i32_0 : i32, i32
  }
  func.func @transform_5(%arg0: i32) -> (i32, i32) {
    %c0_i32 = arith.constant 0 : i32
    %c0_i32_0 = arith.constant 0 : i32
    %c0_i32_1 = arith.constant 0 : i32
    return %c0_i32, %c0_i32_0 : i32, i32
  }
  func.func @transform_6(%arg0: i32) -> (i32, i32) {
    %c0_i32 = arith.constant 0 : i32
    %c0_i32_0 = arith.constant 0 : i32
    %c0_i32_1 = arith.constant 0 : i32
    return %c0_i32, %c0_i32_0 : i32, i32
  }
  func.func @transform_7(%arg0: i32) -> (i32, i32) {
    %c0_i32 = arith.constant 0 : i32
    %c0_i32_0 = arith.constant 0 : i32
    %c0_i32_1 = arith.constant 0 : i32
    return %c0_i32, %c0_i32_0 : i32, i32
  }
  func.func @transform_8(%arg0: i32) -> (i32, i32) {
    %c0_i32 = arith.constant 0 : i32
    %c0_i32_0 = arith.constant 0 : i32
    %c0_i32_1 = arith.constant 0 : i32
    return %c0_i32, %c0_i32_0 : i32, i32
  }
  func.func @transform_9(%arg0: i32) -> (i32, i32) {
    %c0_i32 = arith.constant 0 : i32
    %c0_i32_0 = arith.constant 0 : i32
    return %arg0, %c0_i32 : i32, i32
  }
  func.func @transform_10(%arg0: i32) -> (i32, i32) {
    %c0_i32 = arith.constant 0 : i32
    %c0_i32_0 = arith.constant 0 : i32
    return %arg0, %c0_i32 : i32, i32
  }
}

</mosaic_0001>

<bundles_post_ra>
// kernel: tpu_custom_call.1
= control target key start
LH: loop header
LB: loop body
LE: loop exit
PB: predicated region body
PF: predicated region fallthrough
CT: control target
= control target key end

     0   :  { %16 = vsyncpa [#allocation3], 0  ;;  %s1910_s0 = inlined_call_operand.vmem [shape: f32[8,1024], index: 0, kind: input, shape index: {}]   ;;  %s1911_s1 = inlined_call_operand.vmem [shape: f32[1024,32], index: 1, kind: input, shape index: {}]   ;;  %s1912_s2 = inlined_call_operand.vmem [shape: f32[1,32], index: 2, kind: input, shape index: {}]   ;;  %s1913_s3 = inlined_call_operand.vmem [shape: f32[32,16], index: 3, kind: input, shape index: {}]   ;;  %s1914_s4 = inlined_call_operand.vmem [shape: f32[1,16], index: 4, kind: input, shape index: {}]   ;;  %s1915_s5 = inlined_call_operand.vmem [shape: f32[16,48], index: 5, kind: input, shape index: {}]   ;;  %s1916_s6 = inlined_call_operand.vmem [shape: f32[1,48], index: 6, kind: input, shape index: {}]   ;;  %s1917_s7 = inlined_call_operand.vmem [shape: f32[32,1024], index: 7, kind: input, shape index: {}]   ;;  %s1918_s8 = inlined_call_operand.vmem [shape: f32[1,1024], index: 8, kind: input, shape index: {}]   ;;  %s1919_s9 = inlined_call_operand.hbm [shape: f32[8,1024], index: 9, kind: output, shape index: {0}]   ;;  %s1920_s10 = inlined_call_operand.hbm [shape: f32[8,128], index: 10, kind: output, shape index: {1}]  }
   0x1   :  { %v75_v0 = vld [vmem:[%s1911_s1 + $0xf8] sm:$0xff]  ;;  %v74_v4 = vld [vmem:[%s1911_s1 + $0xf0] sm:$0xff]  ;;  %v73_v8 = vld [vmem:[%s1911_s1 + $0xe8] sm:$0xff] }
   0x2   :  { %v107_v1 = vld [vmem:[%s1911_s1 + $0x1f8] sm:$0xff]  ;;  %1066 = vmatprep.subr.mxu0 %v75_v0  ;;  %v106_v5 = vld [vmem:[%s1911_s1 + $0x1f0] sm:$0xff]  ;;  %v105_v9 = vld [vmem:[%s1911_s1 + $0x1e8] sm:$0xff] }
   0x3   :  { %v59_v2 = vld [vmem:[%s1911_s1 + $0x78] sm:$0xff]  ;;  %1101 = vmatprep.subr.mxu1 %v107_v1  ;;  %v58_v6 = vld [vmem:[%s1911_s1 + $0x70] sm:$0xff]  ;;  %v57_v10 = vld [vmem:[%s1911_s1 + $0x68] sm:$0xff] }
   0x4   :  { %v91_v3 = vld [vmem:[%s1911_s1 + $0x178] sm:$0xff]  ;;  %1067 = vmatpush3.msra.mxu0 %v59_v2  ;;  %v90_v7 = vld [vmem:[%s1911_s1 + $0x170] sm:$0xff]  ;;  %v89_v11 = vld [vmem:[%s1911_s1 + $0x168] sm:$0xff] }
   0x5   :  { %1102 = vmatpush3.msra.mxu1 %v91_v3  ;;  %1068 = vmatprep.subr.mxu0 %v74_v4  ;;  %v72_v12 = vld [vmem:[%s1911_s1 + $0xe0] sm:$0xff]  ;;  %v71_v16 = vld [vmem:[%s1911_s1 + $0xd8] sm:$0xff]  ;;  %v70_v20 = vld [vmem:[%s1911_s1 + $0xd0] sm:$0xff] }
   0x6   :  { %1103 = vmatprep.subr.mxu1 %v106_v5  ;;  %1069 = vmatpush3.msra.mxu0 %v58_v6  ;;  %v104_v13 = vld [vmem:[%s1911_s1 + $0x1e0] sm:$0xff]  ;;  %v103_v17 = vld [vmem:[%s1911_s1 + $0x1d8] sm:$0xff]  ;;  %v102_v21 = vld [vmem:[%s1911_s1 + $0x1d0] sm:$0xff] }
   0x7   :  { %1104 = vmatpush3.msra.mxu1 %v90_v7  ;;  %1070 = vmatprep.subr.mxu0 %v73_v8  ;;  %v56_v14 = vld [vmem:[%s1911_s1 + $0x60] sm:$0xff]  ;;  %v55_v18 = vld [vmem:[%s1911_s1 + $0x58] sm:$0xff]  ;;  %v54_v22 = vld [vmem:[%s1911_s1 + $0x50] sm:$0xff] }
   0x8   :  { %1105 = vmatprep.subr.mxu1 %v105_v9  ;;  %v88_v15 = vld [vmem:[%s1911_s1 + $0x160] sm:$0xff]  ;;  %1071 = vmatpush3.msra.mxu0 %v57_v10  ;;  %v87_v19 = vld [vmem:[%s1911_s1 + $0x158] sm:$0xff]  ;;  %v86_v23 = vld [vmem:[%s1911_s1 + $0x150] sm:$0xff] }
   0x9   :  { %1106 = vmatpush3.msra.mxu1 %v89_v11  ;;  %1072 = vmatprep.subr.mxu0 %v72_v12  ;;  %v69_v24 = vld [vmem:[%s1911_s1 + $0xc8] sm:$0xff]  ;;  %v68_v28 = vld [vmem:[%s1911_s1 + $0xc0] sm:$0xff]  ;;  %v67_v32 = vld [vmem:[%s1911_s1 + $0xb8] sm:$0xff] }
   0xa   :  { %1107 = vmatprep.subr.mxu1 %v104_v13  ;;  %1073 = vmatpush3.msra.mxu0 %v56_v14  ;;  %v101_v25 = vld [vmem:[%s1911_s1 + $0x1c8] sm:$0xff]  ;;  %v100_v29 = vld [vmem:[%s1911_s1 + $0x1c0] sm:$0xff]  ;;  %v99_v33 = vld [vmem:[%s1911_s1 + $0x1b8] sm:$0xff] }
   0xb   :  { %1108 = vmatpush3.msra.mxu1 %v88_v15  ;;  %1074 = vmatprep.subr.mxu0 %v71_v16  ;;  %v53_v26 = vld [vmem:[%s1911_s1 + $0x48] sm:$0xff]  ;;  %v52_v30 = vld [vmem:[%s1911_s1 + $0x40] sm:$0xff]  ;;  %v51_v34 = vld [vmem:[%s1911_s1 + $0x38] sm:$0xff] }
   0xc   :  { %1109 = vmatprep.subr.mxu1 %v103_v17  ;;  %1075 = vmatpush3.msra.mxu0 %v55_v18  ;;  %v85_v27 = vld [vmem:[%s1911_s1 + $0x148] sm:$0xff]  ;;  %v84_v31 = vld [vmem:[%s1911_s1 + $0x140] sm:$0xff]  ;;  %v83_v35 = vld [vmem:[%s1911_s1 + $0x138] sm:$0xff] }
   0xd   :  { %1110 = vmatpush3.msra.mxu1 %v87_v19  ;;  %1076 = vmatprep.subr.mxu0 %v70_v20  ;;  %v66_v36 = vld [vmem:[%s1911_s1 + $0xb0] sm:$0xff]  ;;  %v65_v40 = vld [vmem:[%s1911_s1 + $0xa8] sm:$0xff]  ;;  %v64_v44 = vld [vmem:[%s1911_s1 + $0xa0] sm:$0xff] }
   0xe   :  { %1111 = vmatprep.subr.mxu1 %v102_v21  ;;  %1077 = vmatpush3.msra.mxu0 %v54_v22  ;;  %v98_v37 = vld [vmem:[%s1911_s1 + $0x1b0] sm:$0xff]  ;;  %v97_v41 = vld [vmem:[%s1911_s1 + $0x1a8] sm:$0xff]  ;;  %v96_v45 = vld [vmem:[%s1911_s1 + $0x1a0] sm:$0xff] }
   0xf   :  { %1112 = vmatpush3.msra.mxu1 %v86_v23  ;;  %1078 = vmatprep.subr.mxu0 %v69_v24  ;;  %v50_v38 = vld [vmem:[%s1911_s1 + $0x30] sm:$0xff]  ;;  %v49_v42 = vld [vmem:[%s1911_s1 + $0x28] sm:$0xff]  ;;  %v48_v46 = vld [vmem:[%s1911_s1 + $0x20] sm:$0xff] }
  0x10   :  { %1113 = vmatprep.subr.mxu1 %v101_v25  ;;  %1079 = vmatpush3.msra.mxu0 %v53_v26  ;;  %v82_v39 = vld [vmem:[%s1911_s1 + $0x130] sm:$0xff]  ;;  %v81_v43 = vld [vmem:[%s1911_s1 + $0x128] sm:$0xff]  ;;  %v80_v47 = vld [vmem:[%s1911_s1 + $0x120] sm:$0xff] }
  0x11   :  { %1114 = vmatpush3.msra.mxu1 %v85_v27  ;;  %1080 = vmatprep.subr.mxu0 %v68_v28  ;;  %v63_v48 = vld [vmem:[%s1911_s1 + $0x98] sm:$0xff]  ;;  %v62_v52 = vld [vmem:[%s1911_s1 + $0x90] sm:$0xff]  ;;  %v61_v56 = vld [vmem:[%s1911_s1 + $0x88] sm:$0xff] }
  0x12   :  { %1115 = vmatprep.subr.mxu1 %v100_v29  ;;  %1081 = vmatpush3.msra.mxu0 %v52_v30  ;;  %v95_v49 = vld [vmem:[%s1911_s1 + $0x198] sm:$0xff]  ;;  %v94_v53 = vld [vmem:[%s1911_s1 + $0x190] sm:$0xff]  ;;  %v93_v57 = vld [vmem:[%s1911_s1 + $0x188] sm:$0xff] }
  0x13   :  { %1116 = vmatpush3.msra.mxu1 %v84_v31  ;;  %1082 = vmatprep.subr.mxu0 %v67_v32  ;;  %v47_v50 = vld [vmem:[%s1911_s1 + $0x18] sm:$0xff]  ;;  %v46_v54 = vld [vmem:[%s1911_s1 + $0x10] sm:$0xff]  ;;  %v45_v58 = vld [vmem:[%s1911_s1 + $0x8] sm:$0xff] }
  0x14   :  { %1117 = vmatprep.subr.mxu1 %v99_v33  ;;  %1083 = vmatpush3.msra.mxu0 %v51_v34  ;;  %v79_v51 = vld [vmem:[%s1911_s1 + $0x118] sm:$0xff]  ;;  %v78_v55 = vld [vmem:[%s1911_s1 + $0x110] sm:$0xff]  ;;  %v77_v59 = vld [vmem:[%s1911_s1 + $0x108] sm:$0xff] }
  0x15   :  { %1118 = vmatpush3.msra.mxu1 %v83_v35  ;;  %1084 = vmatprep.subr.mxu0 %v66_v36  ;;  %v60_v60 = vld [vmem:[%s1911_s1 + $0x80] sm:$0xff]  ;;  %v37_v63 = vld [vmem:[%s1910_s0 + $0x8] sm:$0xff]  ;;  %v39_v2 = vld [vmem:[%s1910_s0 + $0x18] sm:$0xff] }
  0x16   :  { %1119 = vmatprep.subr.mxu1 %v98_v37  ;;  %1085 = vmatpush3.msra.mxu0 %v50_v38  ;;  %v92_v61 = vld [vmem:[%s1911_s1 + $0x180] sm:$0xff]  ;;  %v139_v3 = vld [vmem:[%s1911_s1 + $0x2f8] sm:$0xff]  ;;  %v38_v5 = vld [vmem:[%s1910_s0 + $0x10] sm:$0xff] }
  0x17   :  { %1120 = vmatpush3.msra.mxu1 %v82_v39  ;;  %1086 = vmatprep.subr.mxu0 %v65_v40  ;;  %v44_v62 = vld [vmem:[%s1911_s1] sm:$0xff]  ;;  %v171_v4 = vld [vmem:[%s1911_s1 + $0x3f8] sm:$0xff]  ;;  %v138_v8 = vld [vmem:[%s1911_s1 + $0x2f0] sm:$0xff] }
  0x18   :  { %1121 = vmatprep.subr.mxu1 %v97_v41  ;;  %1087 = vmatpush3.msra.mxu0 %v49_v42  ;;  %v76_v0 = vld [vmem:[%s1911_s1 + $0x100] sm:$0xff]  ;;  %v123_v6 = vld [vmem:[%s1911_s1 + $0x278] sm:$0xff]  ;;  %v170_v9 = vld [vmem:[%s1911_s1 + $0x3f0] sm:$0xff] }
  0x19   :  { %1122 = vmatpush3.msra.mxu1 %v81_v43  ;;  %1088 = vmatprep.subr.mxu0 %v64_v44  ;;  %v36_v1 = vld [vmem:[%s1910_s0] sm:$0xff]  ;;  %v155_v7 = vld [vmem:[%s1911_s1 + $0x378] sm:$0xff]  ;;  %v122_v10 = vld [vmem:[%s1911_s1 + $0x270] sm:$0xff] }
  0x1a   :  { %1123 = vmatprep.subr.mxu1 %v96_v45  ;;  %1089 = vmatpush3.msra.mxu0 %v48_v46  ;;  %v154_v11 = vld [vmem:[%s1911_s1 + $0x370] sm:$0xff]  ;;  %v137_v12 = vld [vmem:[%s1911_s1 + $0x2e8] sm:$0xff]  ;;  %v136_v16 = vld [vmem:[%s1911_s1 + $0x2e0] sm:$0xff] }
  0x1b   :  { %1124 = vmatpush3.msra.mxu1 %v80_v47  ;;  %1090 = vmatprep.subr.mxu0 %v63_v48  ;;  %v169_v13 = vld [vmem:[%s1911_s1 + $0x3e8] sm:$0xff]  ;;  %v168_v17 = vld [vmem:[%s1911_s1 + $0x3e0] sm:$0xff]  ;;  %v135_v20 = vld [vmem:[%s1911_s1 + $0x2d8] sm:$0xff] }
  0x1c   :  { %1125 = vmatprep.subr.mxu1 %v95_v49  ;;  %1091 = vmatpush3.msra.mxu0 %v47_v50  ;;  %v121_v14 = vld [vmem:[%s1911_s1 + $0x268] sm:$0xff]  ;;  %v120_v18 = vld [vmem:[%s1911_s1 + $0x260] sm:$0xff]  ;;  %v167_v21 = vld [vmem:[%s1911_s1 + $0x3d8] sm:$0xff] }
  0x1d   :  { %1126 = vmatpush3.msra.mxu1 %v79_v51  ;;  %1092 = vmatprep.subr.mxu0 %v62_v52  ;;  %v153_v15 = vld [vmem:[%s1911_s1 + $0x368] sm:$0xff]  ;;  %v152_v19 = vld [vmem:[%s1911_s1 + $0x360] sm:$0xff]  ;;  %v119_v22 = vld [vmem:[%s1911_s1 + $0x258] sm:$0xff] }
  0x1e   :  { %1127 = vmatprep.subr.mxu1 %v94_v53  ;;  %1093 = vmatpush3.msra.mxu0 %v46_v54  ;;  %v151_v23 = vld [vmem:[%s1911_s1 + $0x358] sm:$0xff]  ;;  %v134_v24 = vld [vmem:[%s1911_s1 + $0x2d0] sm:$0xff]  ;;  %v133_v28 = vld [vmem:[%s1911_s1 + $0x2c8] sm:$0xff] }
  0x1f   :  { %1128 = vmatpush3.msra.mxu1 %v78_v55  ;;  %1094 = vmatprep.subr.mxu0 %v61_v56  ;;  %v166_v25 = vld [vmem:[%s1911_s1 + $0x3d0] sm:$0xff]  ;;  %v165_v29 = vld [vmem:[%s1911_s1 + $0x3c8] sm:$0xff] }
  0x20   :  { %1129 = vmatprep.subr.mxu1 %v93_v57  ;;  %1095 = vmatpush3.msra.mxu0 %v45_v58  ;;  %v118_v26 = vld [vmem:[%s1911_s1 + $0x250] sm:$0xff]  ;;  %v117_v30 = vld [vmem:[%s1911_s1 + $0x248] sm:$0xff] }
  0x21   :  { %1130 = vmatpush3.msra.mxu1 %v77_v59  ;;  %1096 = vmatprep.subr.mxu0 %v60_v60  ;;  %v150_v27 = vld [vmem:[%s1911_s1 + $0x350] sm:$0xff]  ;;  %v149_v31 = vld [vmem:[%s1911_s1 + $0x348] sm:$0xff] }
  0x22   :  { %1131 = vmatprep.subr.mxu1 %v92_v61  ;;  %1097 = vmatpush3.msra.mxu0 %v44_v62 }
  0x23   :  { %243 = vmatprep.mubr.f32.mxu0 %v37_v63  ;;  %1132 = vmatpush3.msra.mxu1 %v76_v0 }
  0x24   :  { %244 = vmatmul.mubr.f32.vlgmr.msra.gmra.mxu0 %v36_v1  ;;  %313 = vmatprep.mubr.f32.mxu1 %v39_v2 }
  0x25   :  { %1136 = vmatprep.subr.mxu0 %v139_v3  ;;  %1171 = vmatprep.subr.mxu1 %v171_v4 }
  0x26   :  { %314 = vmatmul.mubr.f32.vlgmr.msra.gmra.mxu1 %v38_v5  ;;  %1137 = vmatpush3.msra.mxu0 %v123_v6 }
  0x27   :  { %1172 = vmatpush3.msra.mxu1 %v155_v7  ;;  %1138 = vmatprep.subr.mxu0 %v138_v8 }
  0x28   :  { %1173 = vmatprep.subr.mxu1 %v170_v9  ;;  %1139 = vmatpush3.msra.mxu0 %v122_v10 }
  0x29   :  { %1174 = vmatpush3.msra.mxu1 %v154_v11  ;;  %1140 = vmatprep.subr.mxu0 %v137_v12 }
  0x2a   :  { %1175 = vmatprep.subr.mxu1 %v169_v13  ;;  %1141 = vmatpush3.msra.mxu0 %v121_v14 }
  0x2b   :  { %1176 = vmatpush3.msra.mxu1 %v153_v15  ;;  %1142 = vmatprep.subr.mxu0 %v136_v16 }
  0x2c   :  { %1177 = vmatprep.subr.mxu1 %v168_v17  ;;  %1143 = vmatpush3.msra.mxu0 %v120_v18 }
  0x2d   :  { %1178 = vmatpush3.msra.mxu1 %v152_v19  ;;  %1144 = vmatprep.subr.mxu0 %v135_v20 }
  0x2e   :  { %1179 = vmatprep.subr.mxu1 %v167_v21  ;;  %1145 = vmatpush3.msra.mxu0 %v119_v22 }
  0x2f   :  { %1180 = vmatpush3.msra.mxu1 %v151_v23  ;;  %1146 = vmatprep.subr.mxu0 %v134_v24 }
  0x30   :  { %1181 = vmatprep.subr.mxu1 %v166_v25 }
  0x31   :  { %17 = vsyncpa [#allocation5], 0  ;;  %1147 = vmatpush3.msra.mxu0 %v118_v26  ;;  %1182 = vmatpush3.msra.mxu1 %v150_v27  ;;  %v132_v32 = vld [vmem:[%s1911_s1 + $0x2c0] sm:$0xff]  ;;  %v131_v36 = vld [vmem:[%s1911_s1 + $0x2b8] sm:$0xff]  ;;  %v1286_v8 = vmov 0.0   ;;  %vm1287_vm0 = vmmov 0  }
  0x32   :  { %v164_v33 = vld [vmem:[%s1911_s1 + $0x3c0] sm:$0xff]  ;;  %1148 = vmatprep.subr.mxu0 %v133_v28  ;;  %1183 = vmatprep.subr.mxu1 %v165_v29  ;;  %v163_v37 = vld [vmem:[%s1911_s1 + $0x3b8] sm:$0xff]  ;;  %v130_v40 = vld [vmem:[%s1911_s1 + $0x2b0] sm:$0xff]  ;;  %vm471_vm1 = vcmask 261120   ;;  %vm554_vm2 = vcmask 130048   ;;  %vm641_vm3 = vcmask 64512  }
  0x33   :  { %v116_v34 = vld [vmem:[%s1911_s1 + $0x240] sm:$0xff]  ;;  %1149 = vmatpush3.msra.mxu0 %v117_v30  ;;  %1184 = vmatpush3.msra.mxu1 %v149_v31  ;;  %v115_v38 = vld [vmem:[%s1911_s1 + $0x238] sm:$0xff]  ;;  %v162_v41 = vld [vmem:[%s1911_s1 + $0x3b0] sm:$0xff]  ;;  %vm1021_vm4 = vcmask 195712  }
  0x34   :  { %v148_v35 = vld [vmem:[%s1911_s1 + $0x340] sm:$0xff]  ;;  %1150 = vmatprep.subr.mxu0 %v132_v32  ;;  %1185 = vmatprep.subr.mxu1 %v164_v33  ;;  %v147_v39 = vld [vmem:[%s1911_s1 + $0x338] sm:$0xff]  ;;  %v114_v42 = vld [vmem:[%s1911_s1 + $0x230] sm:$0xff] }
  0x35   :  { %1151 = vmatpush3.msra.mxu0 %v116_v34  ;;  %1186 = vmatpush3.msra.mxu1 %v148_v35  ;;  %v146_v43 = vld [vmem:[%s1911_s1 + $0x330] sm:$0xff]  ;;  %v129_v44 = vld [vmem:[%s1911_s1 + $0x2a8] sm:$0xff]  ;;  %v128_v48 = vld [vmem:[%s1911_s1 + $0x2a0] sm:$0xff] }
  0x36   :  { %1152 = vmatprep.subr.mxu0 %v131_v36  ;;  %1187 = vmatprep.subr.mxu1 %v163_v37  ;;  %v161_v45 = vld [vmem:[%s1911_s1 + $0x3a8] sm:$0xff]  ;;  %v160_v49 = vld [vmem:[%s1911_s1 + $0x3a0] sm:$0xff]  ;;  %v127_v52 = vld [vmem:[%s1911_s1 + $0x298] sm:$0xff] }
  0x37   :  { %1153 = vmatpush3.msra.mxu0 %v115_v38  ;;  %1188 = vmatpush3.msra.mxu1 %v147_v39  ;;  %v113_v46 = vld [vmem:[%s1911_s1 + $0x228] sm:$0xff]  ;;  %v112_v50 = vld [vmem:[%s1911_s1 + $0x220] sm:$0xff]  ;;  %v159_v53 = vld [vmem:[%s1911_s1 + $0x398] sm:$0xff] }
  0x38   :  { %1154 = vmatprep.subr.mxu0 %v130_v40  ;;  %1189 = vmatprep.subr.mxu1 %v162_v41  ;;  %v145_v47 = vld [vmem:[%s1911_s1 + $0x328] sm:$0xff]  ;;  %v144_v51 = vld [vmem:[%s1911_s1 + $0x320] sm:$0xff]  ;;  %v111_v54 = vld [vmem:[%s1911_s1 + $0x218] sm:$0xff] }
  0x39   :  { %1155 = vmatpush3.msra.mxu0 %v114_v42  ;;  %1190 = vmatpush3.msra.mxu1 %v146_v43  ;;  %v143_v55 = vld [vmem:[%s1911_s1 + $0x318] sm:$0xff]  ;;  %v126_v56 = vld [vmem:[%s1911_s1 + $0x290] sm:$0xff]  ;;  %v125_v60 = vld [vmem:[%s1911_s1 + $0x288] sm:$0xff] }
  0x3a   :  { %1156 = vmatprep.subr.mxu0 %v129_v44  ;;  %1191 = vmatprep.subr.mxu1 %v161_v45  ;;  %v158_v57 = vld [vmem:[%s1911_s1 + $0x390] sm:$0xff]  ;;  %v157_v61 = vld [vmem:[%s1911_s1 + $0x388] sm:$0xff]  ;;  %v124_v0 = vld [vmem:[%s1911_s1 + $0x280] sm:$0xff] }
  0x3b   :  { %1157 = vmatpush3.msra.mxu0 %v113_v46  ;;  %1192 = vmatpush3.msra.mxu1 %v145_v47  ;;  %v110_v58 = vld [vmem:[%s1911_s1 + $0x210] sm:$0xff]  ;;  %v109_v62 = vld [vmem:[%s1911_s1 + $0x208] sm:$0xff]  ;;  %v156_v1 = vld [vmem:[%s1911_s1 + $0x380] sm:$0xff] }
  0x3c   :  { %1158 = vmatprep.subr.mxu0 %v128_v48  ;;  %1193 = vmatprep.subr.mxu1 %v160_v49  ;;  %v142_v59 = vld [vmem:[%s1911_s1 + $0x310] sm:$0xff]  ;;  %v141_v63 = vld [vmem:[%s1911_s1 + $0x308] sm:$0xff]  ;;  %v108_v2 = vld [vmem:[%s1911_s1 + $0x200] sm:$0xff] }
  0x3d   :  { %1159 = vmatpush3.msra.mxu0 %v112_v50  ;;  %1194 = vmatpush3.msra.mxu1 %v144_v51  ;;  %v41_v3 = vld [vmem:[%s1910_s0 + $0x28] sm:$0xff]  ;;  %v140_v4 = vld [vmem:[%s1911_s1 + $0x300] sm:$0xff]  ;;  %v43_v5 = vld [vmem:[%s1910_s0 + $0x38] sm:$0xff] }
  0x3e   :  { %1160 = vmatprep.subr.mxu0 %v127_v52  ;;  %1195 = vmatprep.subr.mxu1 %v159_v53  ;;  %v40_v6 = vld [vmem:[%s1910_s0 + $0x20] sm:$0xff]  ;;  %v42_v7 = vld [vmem:[%s1910_s0 + $0x30] sm:$0xff]  ;;  %v463_v9 = vld [vmem:[%s1913_s3 + $0x18] sm:$0xff]  ;;  %s1288_s0 = smov 88  }
  0x3f   :  { %1161 = vmatpush3.msra.mxu0 %v111_v54  ;;  %1196 = vmatpush3.msra.mxu1 %v143_v55  ;;  %v462_v10 = vld [vmem:[%s1913_s3 + $0x10] sm:$0xff]  ;;  %v461_v11 = vld [vmem:[%s1913_s3 + $0x8] sm:$0xff]  ;;  %v460_v12 = vld [vmem:[%s1913_s3] sm:$0xff] }
  0x40   :  { %1162 = vmatprep.subr.mxu0 %v126_v56  ;;  %1197 = vmatprep.subr.mxu1 %v158_v57  ;;  %v546_v13 = vld [vmem:[%s1915_s5 + $0x8] sm:$0xff]  ;;  %v1057_v18 = vld [vmem:[%s1912_s2] ss:$0 sm:$0xff]  ;;  %v674_v40 = vld [vmem:[%s1917_s7 + $0xd8] sm:$0xff] }
  0x41   :  { %1163 = vmatpush3.msra.mxu0 %v110_v58  ;;  %1198 = vmatpush3.msra.mxu1 %v142_v59  ;;  %v545_v32 = vld [vmem:[%s1915_s5] sm:$0xff]  ;;  %v672_v39 = vld [vmem:[%s1917_s7 + $0xc8] sm:$0xff]  ;;  %v673_v42 = vld [vmem:[%s1917_s7 + $0xd0] sm:$0xff] }
  0x42   :  { %1164 = vmatprep.subr.mxu0 %v125_v60  ;;  %1199 = vmatprep.subr.mxu1 %v157_v61  ;;  %v1058_v33 = vld [vmem:[%s1914_s4] ss:$0 sm:$0xff]  ;;  %v664_v43 = vld [vmem:[%s1917_s7 + $0x88] sm:$0xff]  ;;  %v666_v44 = vld [vmem:[%s1917_s7 + $0x98] sm:$0xff] }
  0x43   :  { %1165 = vmatpush3.msra.mxu0 %v109_v62  ;;  %1200 = vmatpush3.msra.mxu1 %v141_v63  ;;  %v671_v41 = vld [vmem:[%s1917_s7 + $0xc0] sm:$0xff]  ;;  %v665_v46 = vld [vmem:[%s1917_s7 + $0x90] sm:$0xff]  ;;  %v656_v47 = vld [vmem:[%s1917_s7 + $0x48] sm:$0xff] }
  0x44   :  { %1166 = vmatprep.subr.mxu0 %v124_v0  ;;  %1201 = vmatprep.subr.mxu1 %v156_v1  ;;  %v663_v45 = vld [vmem:[%s1917_s7 + $0x80] sm:$0xff]  ;;  %v658_v48 = vld [vmem:[%s1917_s7 + $0x58] sm:$0xff]  ;;  %v657_v50 = vld [vmem:[%s1917_s7 + $0x50] sm:$0xff] }
  0x45   :  { %1167 = vmatpush3.msra.mxu0 %v108_v2  ;;  %383 = vmatprep.mubr.f32.mxu0 %v41_v3  ;;  %v655_v49 = vld [vmem:[%s1917_s7 + $0x40] sm:$0xff]  ;;  %v648_v51 = vld [vmem:[%s1917_s7 + $0x8] sm:$0xff]  ;;  %v650_v52 = vld [vmem:[%s1917_s7 + $0x18] sm:$0xff] }
  0x46   :  { %1202 = vmatpush3.msra.mxu1 %v140_v4  ;;  %453 = vmatprep.mubr.f32.mxu1 %v43_v5  ;;  %v647_v53 = vld [vmem:[%s1917_s7] sm:$0xff]  ;;  %v649_v54 = vld [vmem:[%s1917_s7 + $0x10] sm:$0xff]  ;;  %v676_v55 = vld [vmem:[%s1917_s7 + $0xe8] sm:$0xff] }
  0x47   :  { %384 = vmatmul.mubr.f32.vlgmr.msra.gmra.mxu0 %v40_v6  ;;  %454 = vmatmul.mubr.f32.vlgmr.msra.gmra.mxu1 %v42_v7  ;;  %v678_v56 = vld [vmem:[%s1917_s7 + $0xf8] sm:$0xff]  ;;  %v1060_v57 = vld [vmem:[%s1916_s6] ss:$0 sm:$0xff]  ;;  %v677_v1 = vld [vmem:[%s1917_s7 + $0xf0] sm:$0xff] }
  0x48   :  { %1214 = vmatprep.subr.mxu0 %v1286_v8  ;;  %1225 = vmatprep.subr.mxu1 %v1286_v8  ;;  %v675_v0 = vld [vmem:[%s1917_s7 + $0xe0] sm:$0xff]  ;;  %v668_v2 = vld [vmem:[%s1917_s7 + $0xa8] sm:$0xff]  ;;  %v670_v3 = vld [vmem:[%s1917_s7 + $0xb8] sm:$0xff] }
  0x49   :  { %1215 = vmatpush3.msra.mxu0 %v463_v9  ;;  %1222 = vmatprep.mubr.msk.f32.mxu0 %vm1287_vm0, %v1286_v8  ;;  %v667_v5 = vld [vmem:[%s1917_s7 + $0xa0] sm:$0xff]  ;;  %v669_v6 = vld [vmem:[%s1917_s7 + $0xb0] sm:$0xff]  ;;  %v660_v7 = vld [vmem:[%s1917_s7 + $0x68] sm:$0xff] }
  0x4a   :  { %1216 = vmatprep.subr.mxu0 %v1286_v8  ;;  %1229 = vmatprep.mubr.msk.f32.mxu1 %vm1287_vm0, %v1286_v8  ;;  %v662_v9 = vld [vmem:[%s1917_s7 + $0x78] sm:$0xff] }
  0x4b   :  { %1217 = vmatpush3.msra.mxu0 %v462_v10  ;;  %1226 = vmatpush3.msra.mxu1 %v546_v13  ;;  %v652_v13 = vld [vmem:[%s1917_s7 + $0x28] sm:$0xff] }
  0x4c   :  { %1218 = vmatprep.subr.mxu0 %v1286_v8  ;;  %1227 = vmatprep.subr.mxu1 %v1286_v8 }
  0x4d   :  { %1219 = vmatpush3.msra.mxu0 %v461_v11  ;;  %1228 = vmatpush3.msra.mxu1 %v545_v32  ;;  %v659_v11 = vld [vmem:[%s1917_s7 + $0x60] sm:$0xff] }
  0x4e   :  { %1220 = vmatprep.subr.mxu0 %v1286_v8  ;;  %748 = vmatprep.subr.mxu1 %v672_v39 }
  0x4f   :  { %1221 = vmatpush3.msra.mxu0 %v460_v12  ;;  %v661_v12 = vld [vmem:[%s1917_s7 + $0x70] sm:$0xff] }
  0x50   :  { %819 = vmatprep.subr.mxu0 %v674_v40 }
  0xe4   :  { %v1098_v14 = vpop.f32.mrf.mxu0 }
  0xe6   :  { %v1133_v15 = vpop.f32.mrf.mxu1  ;;  %v1099_v16 = vpop.f32.mrf.mxu0 }
  0xe7   :  { %v1100_v17 = vadd.f32 %v1099_v16, %v1098_v14  ;;  %v654_v14 = vld [vmem:[%s1917_s7 + $0x38] sm:$0xff]  ;;  %v653_v16 = vld [vmem:[%s1917_s7 + $0x30] sm:$0xff] }
  0xe8   :  { %v1134_v19 = vpop.f32.mrf.mxu1 }
  0xe9   :  { %v246_v20 = vadd.f32 %v1100_v17, %v1057_v18  ;;  %v1135_v21 = vadd.f32 %v1134_v19, %v1133_v15  ;;  %v651_v15 = vld [vmem:[%s1917_s7 + $0x20] sm:$0xff]  ;;  %s1289_s7 = smov 112  }
  0xeb   :  { %v316_v26 = vadd.f32 %v1135_v21, %v246_v20  ;;  %v681_v20 = vlaneseq }
  0xed   :  { %v682_v21 = vshrl.u32 %v681_v20, 7 }
  0xef   :  { %v703_v40 = vsub.s32 5, %v682_v21 }
 0x107   :  { %v1168_v22 = vpop.f32.mrf.mxu0  ;;  %v1203_v23 = vpop.f32.mrf.mxu1 }
 0x109   :  { %v1169_v24 = vpop.f32.mrf.mxu0  ;;  %v1204_v25 = vpop.f32.mrf.mxu1 }
 0x10a   :  { %v1170_v27 = vadd.f32 %v1169_v24, %v1168_v22  ;;  %v1205_v29 = vadd.f32 %v1204_v25, %v1203_v23  ;;  %v683_v22 = vsub.s32 0, %v682_v21  ;;  %v679_v23 = vld [vmem:[%s1918_s8] sm:$0xff]  ;;  %v687_v24 = vsub.s32 1, %v682_v21  ;;  %s1290_s8 = smov [#allocation2]  }
 0x10b   :  { %v695_v25 = vsub.s32 3, %v682_v21  ;;  %s1035_s29 = sshll.u32 %s1290_s8, 4  ;;  %s1036_s29 = int_to_ptr.vmem [resolvable:$true] %s1035_s29 }
 0x10c   :  { %v386_v28 = vadd.f32 %v1170_v27, %v316_v26  ;;  %v684_v26 = vrot.slane %v679_v23, %v683_v22  ;;  %s1242_s30 = scalar_lea.vmem %s1036_s29, 1024  ;;  %p1247_p1 = scmp.lt.s32.totalorder %s1036_s29, %s1036_s29 }
 0x10d   :  { %p1243_p0 = scmp.ne.s32.totalorder %s1036_s29, %s1242_s30  ;;  %p1248_p2 = scmp.lt.s32.totalorder %s1242_s30, %s1242_s30 }
 0x10e   :  { %v456_v30 = vadd.f32 %v1205_v29, %v386_v28  ;;  %v688_v28 = vrot.slane %v679_v23, %v687_v24  ;;  %v696_v29 = vrot.slane %v679_v23, %v695_v25 }
 0x10f   :  { %p1249_p3 = por %p1248_p2, %p1247_p1 }
 0x110   :  { %v459_v31 = vmax.f32 %v456_v30, 0.0 }
 0x111   :  { %p1250_p4 = pnand %p1249_p3, %p1243_p0 }
 0x112   :  { %1223 = vmatmul.mubr.msk.f32.vlgmr.msra.gmra.mxu0 %vm471_vm1, %v459_v31 }
 0x113   :  { %859 = vmatprep.mubr.f32.mxu0 %v1286_v8  ;;  %820 = vmatpush1.msra.mxu0 %v673_v42 }
 0x114   :  { %821 = vmatprep.subr.mxu0 %v666_v44  ;;  %v704_v44 = vrot.slane %v679_v23, %v703_v40 }
 0x115   :  { %822 = vmatpush1.msra.mxu0 %v665_v46 }
 0x116   :  { %823 = vmatprep.subr.mxu0 %v658_v48 }
 0x117   :  { %824 = vmatpush1.msra.mxu0 %v657_v50 }
 0x118   :  { %825 = vmatprep.subr.mxu0 %v650_v52 }
 0x119   :  { %826 = vmatpush1.msra.mxu0 %v649_v54 }
 0x11a   :  { %961 = vmatprep.subr.mxu0 %v678_v56 }
 0x1d2   :  { %v541_v34 = vpop.f32.mrf.mxu0 }
 0x1d3   :  { %v542_v35 = vadd.f32 %v1058_v33, %v541_v34 }
 0x1d4   :  { %v1224_v36 = vpop.f32.mrf.mxu0 }
 0x1d5   :  { %1230 = vmatmul.mubr.msk.f32.vlgmr.msra.gmra.mxu1 %vm554_vm2, %v542_v35  ;;  %1016 = vst.msk [vmem:[#allocation4] sm:$0xff] %vm554_vm2, %v542_v35  ;;  %v629_v37 = vmul.f32 %v542_v35, %v542_v35  ;;  %v699_v36 = vsub.s32 4, %v682_v21 }
 0x1d6   :  { %788 = vmatprep.mubr.f32.mxu1 %v1286_v8  ;;  %749 = vmatpush1.msra.mxu1 %v671_v41  ;;  %v711_v41 = vsub.s32 7, %v682_v21 }
 0x1d7   :  { %v630_v38 = vsel %vm554_vm2, %v629_v37, 0.0  ;;  %750 = vmatprep.subr.mxu1 %v664_v43  ;;  %v707_v37 = vsub.s32 6, %v682_v21  ;;  %v700_v42 = vrot.slane %v679_v23, %v699_v36 }
 0x1d8   :  { %631 = vadd.xlane.f32.xlu0 %v630_v38  ;;  %751 = vmatpush1.msra.mxu1 %v663_v45  ;;  %v712_v45 = vrot.slane %v679_v23, %v711_v41 }
 0x1d9   :  { %752 = vmatprep.subr.mxu1 %v656_v47  ;;  %v708_v43 = vrot.slane %v679_v23, %v707_v37 }
 0x1da   :  { %753 = vmatpush1.msra.mxu1 %v655_v49 }
 0x1db   :  { %754 = vmatprep.subr.mxu1 %v648_v51 }
 0x1dc   :  { %755 = vmatpush1.msra.mxu1 %v647_v53 }
 0x1dd   :  { %890 = vmatprep.subr.mxu1 %v676_v55 }
 0x261   :  { %v632_v60 = vpop.xlane.xlu0 %631 }
 0x295   :  { %v624_v58 = vpop.f32.mrf.mxu1 }
 0x296   :  { %v625_v59 = vadd.f32 %v1060_v57, %v624_v58 }
 0x297   :  { %v1231_v61 = vpop.f32.mrf.mxu1 }
 0x298   :  { %v628_v62 = vmax.f32 %v625_v59, 0.0  ;;  %v633_v63 = vadd.f32 %v632_v60, %v625_v59 }
 0x29a   :  { %v634_v4 = vmax.f32 %v633_v63, 0.0  ;;  %1062 = vmatmul.mubr.msk.f32.vlgmr.msra.gmra.mxu1 %vm471_vm1, %v628_v62  ;;  %1063 = vmatmul.mubr.msk.f32.vlgmr.msra.gmra.mxu0 %vm471_vm1, %v628_v62 }
 0x29b   :  { %891 = vmatpush1.msra.mxu1 %v675_v0  ;;  %962 = vmatpush1.msra.mxu0 %v677_v1 }
 0x29c   :  { %v635_v10 = vadd.f32 1.0, %v634_v4  ;;  %892 = vmatprep.subr.mxu1 %v668_v2  ;;  %963 = vmatprep.subr.mxu0 %v670_v3 }
 0x29d   :  { %893 = vmatpush1.msra.mxu1 %v667_v5  ;;  %964 = vmatpush1.msra.mxu0 %v669_v6 }
 0x29e   :  { %1238 = vrcp.f32 %v635_v10  ;;  %894 = vmatprep.subr.mxu1 %v660_v7  ;;  %965 = vmatprep.subr.mxu0 %v662_v9 }
 0x29f   :  { %895 = vmatpush1.msra.mxu1 %v659_v11  ;;  %966 = vmatpush1.msra.mxu0 %v661_v12 }
 0x2a0   :  { %896 = vmatprep.subr.mxu1 %v652_v13  ;;  %967 = vmatprep.subr.mxu0 %v654_v14 }
 0x2a1   :  { %897 = vmatpush1.msra.mxu1 %v651_v15  ;;  %930 = vmatprep.mubr.f32.mxu1 %v1286_v8 }
 0x2a2   :  { %968 = vmatpush1.msra.mxu0 %v653_v16  ;;  %1001 = vmatprep.mubr.f32.mxu0 %v1286_v8  ;;  %v691_v8 = vsub.s32 2, %v682_v21 }
 0x2a3   :  { %1064 = vmatmul.mubr.msk.f32.vlgmr.msra.gmra.mxu1 %vm471_vm1, %v628_v62  ;;  %1065 = vmatmul.mubr.msk.f32.vlgmr.msra.gmra.mxu0 %vm471_vm1, %v628_v62 }
 0x2a4   :  { %v692_v27 = vrot.slane %v679_v23, %v691_v8 }
 0x2ab   :  { %v1895_v17 = vpop.eup %1238 }
 0x2ac   :  { %638 = vrot.lane.b32.xlu0 %v1895_v17, %s1288_s0 }
 0x31e   :  { %v639_v18 = vpop.permute.xlu0 %638 }
 0x31f   :  { %v642_v19 = vsel %vm641_vm3, %v639_v18, 0.0 }
 0x320   :  { %643 = vadd.xlane.f32.xlu1 %v642_v19 }
 0x331   :  { %1018 = vrot.lane.b32.xlu1 %v625_v59, %s1289_s7 }
 0x35a   :  { %v790_v30 = vpop.f32.mrf.mxu1  ;;  %v861_v31 = vpop.f32.mrf.mxu0 }
 0x35b   :  { %v791_v32 = vadd.f32 %v790_v30, %v684_v26  ;;  %v862_v33 = vadd.f32 %v861_v31, %v692_v27 }
 0x35c   :  { %v792_v34 = vpop.f32.mrf.mxu1  ;;  %v863_v35 = vpop.f32.mrf.mxu0 }
 0x35d   :  { %1008 = vst [vmem:[#allocation2] sm:$0xff] %v791_v32  ;;  %1010 = vst [vmem:[#allocation2 + $0x10] sm:$0xff] %v862_v33  ;;  %v793_v38 = vadd.f32 %v792_v34, %v688_v28  ;;  %v864_v39 = vadd.f32 %v863_v35, %v696_v29 }
 0x35f   :  { %1009 = vst [vmem:[#allocation2 + $0x8] sm:$0xff] %v793_v38  ;;  %1011 = vst [vmem:[#allocation2 + $0x18] sm:$0xff] %v864_v39 }
 0x363   :  { %v932_v46 = vpop.f32.mrf.mxu1  ;;  %v1003_v47 = vpop.f32.mrf.mxu0 }
 0x364   :  { %v933_v48 = vadd.f32 %v932_v46, %v700_v42  ;;  %v1004_v49 = vadd.f32 %v1003_v47, %v708_v43 }
 0x365   :  { %v934_v50 = vpop.f32.mrf.mxu1  ;;  %v1005_v51 = vpop.f32.mrf.mxu0 }
 0x366   :  { %1012 = vst [vmem:[#allocation2 + $0x20] sm:$0xff] %v933_v48  ;;  %1014 = vst [vmem:[#allocation2 + $0x30] sm:$0xff] %v1004_v49  ;;  %v935_v52 = vadd.f32 %v934_v50, %v704_v44  ;;  %v1006_v53 = vadd.f32 %v1005_v51, %v712_v45 }
 0x368   :  { %1013 = vst [vmem:[#allocation2 + $0x28] sm:$0xff] %v935_v52  ;;  %1015 = vst [vmem:[#allocation2 + $0x38] sm:$0xff] %v1006_v53 }
 0x3a9   :  { %v644_v54 = vpop.xlane.xlu1 %643 }
 0x3aa   :  { %1240 = vrcp.f32 %v644_v54 }
 0x3ad   :  { %v1019_v55 = vpop.permute.xlu1 %1018 }
 0x3ae   :  { %1022 = vst.msk [vmem:[#allocation4] sm:$0xff] %vm1021_vm4, %v1019_v55 }
 0x3af   :  { %1253 = shalt.err (!%p1250_p4)
}
 0x3b0   :  { %1038 = dma.vmem_to_hbm [thread:$0]  %s1036_s29, 1024, %s1919_s9, [#allocation3]   ;;  %vm1027_vm5 = vcmask 261312  }
 0x3b1   :  { %s1291_s12 = smov [#allocation4]  }
 0x3b2   :  { %s1045_s13 = sshll.u32 %s1291_s12, 4  ;;  %s1046_s13 = int_to_ptr.vmem [resolvable:$true] %s1045_s13 }
 0x3b3   :  { %s1262_s14 = scalar_lea.vmem %s1046_s13, 128  ;;  %p1267_p6 = scmp.lt.s32.totalorder %s1046_s13, %s1046_s13 }
 0x3b4   :  { %p1263_p5 = scmp.ne.s32.totalorder %s1046_s13, %s1262_s14  ;;  %p1268_p7 = scmp.lt.s32.totalorder %s1262_s14, %s1262_s14 }
 0x3b6   :  { %p1269_p8 = por %p1268_p7, %p1267_p6 }
 0x3b7   :  { %v1241_v56 = vpop.eup %1240 }
 0x3b8   :  { %v646_v57 = vmul.f32 %v1241_v56, %v1895_v17  ;;  %p1270_p9 = pnand %p1269_p8, %p1263_p5 }
 0x3ba   :  { %1024 = vrot.lane.b32.xlu1 %v646_v57, %s1289_s7 }
 0x42c   :  { %v1025_v58 = vpop.permute.xlu1 %1024 }
 0x42d   :  { %1028 = vst.msk [vmem:[#allocation4] sm:$0xff] %vm1027_vm5, %v1025_v58 }
 0x42e   :  { %1273 = shalt.err (!%p1270_p9)
}
 0x42f   :  { %1048 = dma.vmem_to_hbm [thread:$0]  %s1046_s13, 128, %s1920_s10, [#allocation5]  }
 0x430   :  { %1282 = dma.done.wait [#allocation3], 1024  }
 0x431   :  { %1283 = vsyncadd [#allocation3], 4294966272 }
 0x432   :  { %1284 = dma.done.wait [#allocation5], 128  }
 0x433   :  { %1285 = vsyncadd [#allocation5], 4294967168 }
 0x434   :  { %1055 = vsyncpa [#allocation3], 1 }
 0x435   :  { %1056 = vsyncpa [#allocation5], 1 }

</bundles_post_ra>
